<compile_context>
chip_gen: v5e
topology: v5e:2x2
jax: 0.10.0
libtpu: 0.0.40
codegen_flags: <defaults>
</compile_context>

<pallas_src>
import math

import jax
import jax.numpy as jnp
from jax.experimental import pallas as pl
from jax.experimental.pallas import tpu as pltpu


def _sd_kernel(scale_ref, nfeat_ref, efeat_ref, nout_ref, eout_ref):
    # scale_ref: (TN, 2) f32 -- column 0 = node scale, column 1 = edge scale
    # (each already divided by survival_rate).
    s = scale_ref[...]
    ns = s[:, 0:1]                                   # (TN, 1) f32
    es = s[:, 1:2]                                   # (TN, 1) f32
    # Multiply in f32 and cast the product down (no pre-rounding of the scale).
    nout_ref[...] = (nfeat_ref[...] * ns).astype(nout_ref.dtype)   # (TN, D)
    eout_ref[...] = (efeat_ref[...] * es).astype(eout_ref.dtype)   # (TN, K*D)


def _vmem_capacity_bytes():
    """Physical per-core VMEM; conservative 64 MiB fallback (v7x-sized)."""
    cap = 64 * 1024 * 1024
    try:
        info = pltpu.get_tpu_info()
        v = getattr(info, "vmem_capacity_bytes", None)
        if v:
            cap = int(v)
    except Exception:
        pass
    return cap


def _num_tensorcores():
    """Best-effort TensorCore-per-chip count; falls back to 1 (v5e/v6e)."""
    for probe in (lambda: jax.devices()[0], pltpu.get_tpu_info):
        try:
            obj = probe()
            for attr in ("num_cores", "num_tensorcores", "tensorcore_count",
                         "core_count"):
                v = getattr(obj, attr, None)
                if isinstance(v, int) and v > 0:
                    return v
        except Exception:
            pass
    return 1


def _sublane_multiple(itemsize):
    # f32 -> 8, bf16 -> 16, int8/fp8 -> 32 (packed sublanes).
    return max(8, 32 // max(int(itemsize), 1))


def _choose_node_tile(n, d_node, d_edge_flat, node_itemsize, edge_itemsize,
                      max_rows, budget_bytes, n_tc):
    """Pick the node-tile (sublane) size from a VMEM budget."""
    # Sublane multiple from the *narrowest* dtype present (LCM across streams)
    # so both the node and the dominant edge stream stay tile-aligned.
    sublane = (_sublane_multiple(node_itemsize) * _sublane_multiple(edge_itemsize)
               // math.gcd(_sublane_multiple(node_itemsize),
                           _sublane_multiple(edge_itemsize)))
    # Double-buffered resident bytes per node row:
    #   (node in+out) and (edge in+out) tiles x 2 buffers, each at its own
    #   itemsize, + one packed f32 scale tile (lane-padded to 128) x 2 buffers.
    per_row = (2 * 2 * d_node * int(node_itemsize)
               + 2 * 2 * d_edge_flat * int(edge_itemsize)
               + 2 * 128 * 4)
    tn = budget_bytes // per_row
    tn = max(sublane, min(max_rows, tn))
    tn = (tn // sublane) * sublane
    n_ceil = ((n + sublane - 1) // sublane) * sublane
    tn = min(tn, n_ceil)
    # On multi-TC chips (v7x) keep >= 2 grid steps per core so each core keeps
    # a double-buffered pipeline after the "parallel" axis is split.  On
    # single-TC chips (v5e/v6e) skip the cap: halving TN only adds overhead.
    if n_tc > 1:
        min_steps = 2 * n_tc
        if n_ceil >= min_steps * sublane:
            tn = min(tn, max(sublane, (n_ceil // min_steps // sublane) * sublane))
    return max(tn, sublane)


def stochastic_depth_pallas(node_features, edge_features, node_batch, p, key,
                            training=True, num_graphs=None,
                            max_tile_rows=2048):
    """Mirrors StochasticDepth.forward semantics."""
    if p < 0.0 or p > 1.0:
        raise ValueError(f"drop probability has to be between 0 and 1, but got {p}")
    if not training or p == 0.0:
        return node_features, edge_features

    N, D = node_features.shape
    N_e, K, D_e = edge_features.shape
    assert N_e == N, "node/edge feature node counts must match"

    if num_graphs is None:
        # NOTE: forces a device sync and breaks under jit tracing; pass
        # num_graphs explicitly when jitting.
        num_graphs = int(jnp.max(node_batch)) + 1

    survival_rate = 1.0 - p

    # Independent per-graph noise for node and edge features (matches the two
    # independent bernoulli_ draws in the PyTorch module). Computed in f32.
    knode, kedge = jax.random.split(key)
    noise_node = jax.random.bernoulli(
        knode, survival_rate, (num_graphs,)).astype(jnp.float32)
    noise_edge = jax.random.bernoulli(
        kedge, survival_rate, (num_graphs,)).astype(jnp.float32)
    if survival_rate > 0.0:
        noise_node = noise_node / survival_rate
        noise_edge = noise_edge / survival_rate

    # Per-node scales, packed into a single (N, 2) f32 array (tiny gather over
    # [N] ints stays in XLA): column 0 = node scale, column 1 = edge scale.
    scale_packed = jnp.stack(
        [noise_node[node_batch], noise_edge[node_batch]], axis=1)

    # Lane-dense edge layout: [N, K, D] -> [N, K*D] (contiguous, free reshape).
    KD = K * D_e
    edge_flat = edge_features.reshape(N, KD)

    node_itemsize = jnp.dtype(node_features.dtype).itemsize
    edge_itemsize = jnp.dtype(edge_features.dtype).itemsize

    # Generation-aware VMEM sizing: ~3/8 of physical VMEM as tiling budget,
    # ~3/4 as the scoped limit (=> 48/96 MiB on 128 MiB parts, 24/48 MiB on v7x).
    vmem_cap = _vmem_capacity_bytes()
    vmem_budget_bytes = (vmem_cap * 3) // 8
    vmem_limit_bytes = (vmem_cap * 3) // 4
    n_tc = _num_tensorcores()

    TN = _choose_node_tile(N, D, KD, node_itemsize, edge_itemsize,
                           max_rows=max_tile_rows,
                           budget_bytes=vmem_budget_bytes,
                           n_tc=n_tc)
    grid = (pl.cdiv(N, TN),)

    cost = pl.CostEstimate(
        flops=N * (D + KD),
        transcendentals=0,
        bytes_accessed=(2 * N * D * node_itemsize
                        + 2 * N * KD * edge_itemsize
                        + N * 2 * 4),
    )

    node_out, edge_flat_out = pl.pallas_call(
        _sd_kernel,
        out_shape=(
            jax.ShapeDtypeStruct((N, D), node_features.dtype),
            jax.ShapeDtypeStruct((N, KD), edge_features.dtype),
        ),
        grid=grid,
        in_specs=[
            pl.BlockSpec((TN, 2), lambda i: (i, 0)),    # packed scales (f32)
            pl.BlockSpec((TN, D), lambda i: (i, 0)),    # node features
            pl.BlockSpec((TN, KD), lambda i: (i, 0)),   # edge features (flat)
        ],
        out_specs=[
            pl.BlockSpec((TN, D), lambda i: (i, 0)),
            pl.BlockSpec((TN, KD), lambda i: (i, 0)),
        ],
        # Donate feature buffers to their outputs (effective under jit with
        # donation; XLA inserts copies otherwise, so this is always safe).
        input_output_aliases={1: 0, 2: 1},
        cost_estimate=cost,
        compiler_params=pltpu.CompilerParams(
            dimension_semantics=("parallel",),
            vmem_limit_bytes=int(vmem_limit_bytes),
        ),
    )(scale_packed, node_features, edge_flat)

    return node_out, edge_flat_out.reshape(N, K, D_e)


if __name__ == "__main__":
    key = jax.random.PRNGKey(0)
    k_node, k_edge, k_noise = jax.random.split(key, 3)

    N, K, D = 16, 8, 32  # num_nodes, edges-per-node slab, hidden dim
    node_features = jax.random.normal(k_node, (N, D), dtype=jnp.float32)
    edge_features = jax.random.normal(k_edge, (N, K, D), dtype=jnp.float32)
    # two graphs: first 9 nodes belong to graph 0, remaining 7 to graph 1
    node_batch = jnp.array([0] * 9 + [1] * 7, dtype=jnp.int32)
    num_graphs = 2
    p = 0.5

    # Pure-JAX reference with the same noise draws (computed BEFORE the kernel
    # call so buffer donation can never interfere with the comparison).
    survival = 1.0 - p
    kn, ke = jax.random.split(k_noise)
    nn = jax.random.bernoulli(kn, survival, (num_graphs,)).astype(jnp.float32) / survival
    ne = jax.random.bernoulli(ke, survival, (num_graphs,)).astype(jnp.float32) / survival
    ref_node = node_features * nn[node_batch][:, None]
    ref_edge = edge_features * ne[node_batch][:, None, None]
    ref_node = jax.block_until_ready(ref_node)
    ref_edge = jax.block_until_ready(ref_edge)

    node_out, edge_out = stochastic_depth_pallas(
        node_features, edge_features, node_batch, p, k_noise,
        training=True, num_graphs=num_graphs)
    node_out = jax.block_until_ready(node_out)
    edge_out = jax.block_until_ready(edge_out)

    assert node_out.shape == node_features.shape and node_out.dtype == node_features.dtype
    assert edge_out.shape == edge_features.shape and edge_out.dtype == edge_features.dtype
    assert jnp.allclose(node_out, ref_node, atol=1e-6), "node mismatch"
    assert jnp.allclose(edge_out, ref_edge, atol=1e-6), "edge mismatch"

    # Eval-mode / p==0 early-return path must pass inputs through untouched.
    n_eval, e_eval = stochastic_depth_pallas(
        node_features, edge_features, node_batch, p, k_noise,
        training=False, num_graphs=num_graphs)
    assert jnp.array_equal(n_eval, node_features)
    assert jnp.array_equal(e_eval, edge_features)

    print("KERNEL_OK")
</pallas_src>

<mosaic_0001>
module attributes {stable_mosaic.version = 11 : i64} {
  func.func @_sd_kernel(%arg0: i32, %arg1: memref<16x2xf32, #tpu.memory_space<vmem>>, %arg2: memref<16x32xf32, #tpu.memory_space<vmem>>, %arg3: memref<16x256xf32, #tpu.memory_space<vmem>>, %arg4: memref<16x32xf32, #tpu.memory_space<vmem>>, %arg5: memref<16x256xf32, #tpu.memory_space<vmem>>) attributes {dimension_semantics = [#tpu.dimension_semantics<parallel>], iteration_bounds = array<i64: 1>, scalar_prefetch = 0 : i64, scratch_operands = 0 : i64, tpu.core_type = #tpu.core_type<tc>, window_params = [{transform_indices = @transform_0, window_bounds = array<i64: 16, 2>}, {transform_indices = @transform_1, window_bounds = array<i64: 16, 32>}, {transform_indices = @transform_2, window_bounds = array<i64: 16, 256>}, {transform_indices = @transform_3, window_bounds = array<i64: 16, 32>}, {transform_indices = @transform_4, window_bounds = array<i64: 16, 256>}]} {
    %c0 = arith.constant 0 : index
    %c0_0 = arith.constant 0 : index
    %0 = vector.load %arg1[%c0, %c0_0] : memref<16x2xf32, #tpu.memory_space<vmem>>, vector<16x2xf32>
    %1 = vector.extract_strided_slice %0 {offsets = [0, 0], sizes = [16, 1], strides = [1, 1]} : vector<16x2xf32> to vector<16x1xf32>
    %2 = vector.extract_strided_slice %0 {offsets = [0, 1], sizes = [16, 1], strides = [1, 1]} : vector<16x2xf32> to vector<16x1xf32>
    %c0_1 = arith.constant 0 : index
    %c0_2 = arith.constant 0 : index
    %3 = vector.load %arg2[%c0_1, %c0_2] : memref<16x32xf32, #tpu.memory_space<vmem>>, vector<16x32xf32>
    %4 = vector.broadcast %1 : vector<16x1xf32> to vector<16x32xf32>
    %5 = arith.mulf %3, %4 : vector<16x32xf32>
    %c0_3 = arith.constant 0 : index
    %c0_4 = arith.constant 0 : index
    %6 = vector.load %arg4[%c0_3, %c0_4] : memref<16x32xf32, #tpu.memory_space<vmem>>, vector<16x32xf32>
    tpu.vector_store %arg4[%c0_3, %c0_4], %5 {strides = array<i32>} : memref<16x32xf32, #tpu.memory_space<vmem>>, vector<16x32xf32>,
    %c0_5 = arith.constant 0 : index
    %c0_6 = arith.constant 0 : index
    %7 = vector.load %arg3[%c0_5, %c0_6] : memref<16x256xf32, #tpu.memory_space<vmem>>, vector<16x256xf32>
    %8 = vector.broadcast %2 : vector<16x1xf32> to vector<16x256xf32>
    %9 = arith.mulf %7, %8 : vector<16x256xf32>
    %c0_7 = arith.constant 0 : index
    %c0_8 = arith.constant 0 : index
    %10 = vector.load %arg5[%c0_7, %c0_8] : memref<16x256xf32, #tpu.memory_space<vmem>>, vector<16x256xf32>
    tpu.vector_store %arg5[%c0_7, %c0_8], %9 {strides = array<i32>} : memref<16x256xf32, #tpu.memory_space<vmem>>, vector<16x256xf32>,
    return
  }
  func.func @transform_0(%arg0: i32) -> (i32, i32) {
    %c0_i32 = arith.constant 0 : i32
    %c0_i32_0 = arith.constant 0 : i32
    return %arg0, %c0_i32 : i32, i32
  }
  func.func @transform_1(%arg0: i32) -> (i32, i32) {
    %c0_i32 = arith.constant 0 : i32
    %c0_i32_0 = arith.constant 0 : i32
    return %arg0, %c0_i32 : i32, i32
  }
  func.func @transform_2(%arg0: i32) -> (i32, i32) {
    %c0_i32 = arith.constant 0 : i32
    %c0_i32_0 = arith.constant 0 : i32
    return %arg0, %c0_i32 : i32, i32
  }
  func.func @transform_3(%arg0: i32) -> (i32, i32) {
    %c0_i32 = arith.constant 0 : i32
    %c0_i32_0 = arith.constant 0 : i32
    return %arg0, %c0_i32 : i32, i32
  }
  func.func @transform_4(%arg0: i32) -> (i32, i32) {
    %c0_i32 = arith.constant 0 : i32
    %c0_i32_0 = arith.constant 0 : i32
    return %arg0, %c0_i32 : i32, i32
  }
}

</mosaic_0001>

<bundles_post_ra>
// kernel: tpu_custom_call.1
= control target key start
LH: loop header
LB: loop body
LE: loop exit
PB: predicated region body
PF: predicated region fallthrough
CT: control target
= control target key end

     0   :  { %10 = vsyncpa [#allocation3], 0  ;;  %s311_s0 = inlined_call_operand.vmem [shape: f32[16,2], index: 0, kind: input, shape index: {}]   ;;  %s312_s1 = inlined_call_operand.hbm [shape: f32[16,32], index: 1, kind: input, shape index: {}, may-alias: {1,3}]   ;;  %s313_s2 = inlined_call_operand.hbm [shape: f32[16,256], index: 2, kind: input, shape index: {}, may-alias: {2,4}]   ;;  %s314_s3 = inlined_call_operand.hbm [shape: f32[16,32], index: 3, kind: output, shape index: {0}, may-alias: {1,3}]   ;;  %s315_s4 = inlined_call_operand.hbm [shape: f32[16,256], index: 4, kind: output, shape index: {1}, may-alias: {2,4}]  }
   0x1   :  { %11 = vsyncpa [#allocation6], 0 }
   0x2   :  { %12 = vsyncpa [#allocation4], 0 }
   0x3   :  { %13 = vsyncpa [#allocation9], 0  ;;  %s20_s17 = sshll.u32 %s312_s1, 4  ;;  %s244_s18 = smov [#allocation2]   ;;  %s21_s17 = int_to_ptr.hbm [resolvable:$true] %s20_s17 }
   0x4   :  { %s22_s19 = sshll.u32 %s244_s18, 4  ;;  %s33_s22 = sshll.u32 %s313_s2, 4  ;;  %s23_s19 = int_to_ptr.vmem [resolvable:$true] %s22_s19  ;;  %s34_s22 = int_to_ptr.hbm [resolvable:$true] %s33_s22 }
   0x5   :  { %s245_s23 = smov 128   ;;  %s246_s24 = smov 8  }
   0x6   :  { %28 = dma.hbm_to_vmem [thread:$0]  %s21_s17, 256, %s23_s19, [#allocation3], %s245_s23, %s245_s23, %s246_s24  }
   0x7   :  { %s247_s25 = smov [#allocation5]   ;;  %s248_s27 = smov 256  }
   0x8   :  { %s35_s26 = sshll.u32 %s247_s25, 4  ;;  %s249_s1 = smov 16   ;;  %s36_s26 = int_to_ptr.vmem [resolvable:$true] %s35_s26 }
   0x9   :  { %41 = dma.hbm_to_vmem [thread:$0]  %s34_s22, 512, %s36_s26, [#allocation6], %s248_s27, %s248_s27, %s249_s1  }
   0xa   :  { %236 = dma.done.wait [#allocation3], 256  }
   0xb   :  { %237 = vsyncadd [#allocation3], 4294967040 }
   0xc   :  { %238 = dma.done.wait [#allocation6], 512  }
   0xd   :  { %239 = vsyncadd [#allocation6], 4294966784  ;;  %v250_v0 = vmov 1   ;;  %v251_v1 = vmov 0   ;;  %v50_v2 = vld [vmem:[%s311_s0] sm:$0xff]  ;;  %v51_v3 = vld [vmem:[%s311_s0 + $0x8] sm:$0xff] }
   0xe   :  { %138 = vset.pattern.permute.xlu1 %v250_v0  ;;  %137 = vset.pattern.permute.xlu0 %v251_v1  ;;  %v69_v4 = vld [vmem:[#allocation5] sm:$0xff]  ;;  %v70_v5 = vld [vmem:[#allocation5 + $0x8] sm:$0xff]  ;;  %v52_v6 = vld [vmem:[#allocation2] sm:$0xff]  ;;  %vm66_vm0 = vcmask 261120   ;;  %s252_s0 = smov [#allocation8]   ;;  %s108_s8 = sshll.u32 %s315_s4, 4  ;;  %s109_s8 = int_to_ptr.hbm [resolvable:$true] %s108_s8 }
   0xf   :  { %74 = vperm.xlu1 %138, %v50_v2   ;;  %56 = vperm.xlu0 %137, %v50_v2   ;;  %v71_v12 = vld [vmem:[#allocation5 + $0x10] sm:$0xff]  ;;  %v72_v13 = vld [vmem:[#allocation5 + $0x18] sm:$0xff]  ;;  %s106_s5 = sshll.u32 %s252_s0, 4  ;;  %s253_s9 = smov [#allocation7]   ;;  %s107_s5 = int_to_ptr.vmem [resolvable:$true] %s106_s5 }
  0x10   :  { %v53_v14 = vld [vmem:[#allocation2 + $0x8] sm:$0xff]  ;;  %s93_s10 = sshll.u32 %s253_s9, 4  ;;  %s95_s13 = sshll.u32 %s314_s3, 4  ;;  %s94_s10 = int_to_ptr.vmem [resolvable:$true] %s93_s10  ;;  %s96_s13 = int_to_ptr.hbm [resolvable:$true] %s95_s13 }
  0x17   :  { %78 = vperm.xlu1 %138, %v51_v3   ;;  %61 = vperm.xlu0 %137, %v51_v3  }
  0x1f   :  { %139 = vset.pattern.permute.xlu0 %v250_v0 }
  0x81   :  { %v75_v7 = vpop.permute.xlu1 %74  ;;  %v57_v8 = vpop.permute.xlu0 %56 }
  0x82   :  { %v81_v9 = vmul.f32 %v75_v7, %v69_v4  ;;  %v82_v10 = vmul.f32 %v75_v7, %v70_v5  ;;  %v64_v11 = vmul.f32 %v57_v8, %v52_v6 }
  0x84   :  { %85 = vst [vmem:[#allocation8] sm:$0xff] %v81_v9 }
  0x85   :  { %86 = vst [vmem:[#allocation8 + $0x8] sm:$0xff] %v82_v10 }
  0x86   :  { %67 = vst.msk [vmem:[#allocation7] sm:$0xff] %vm66_vm0, %v64_v11 }
  0x89   :  { %v79_v15 = vpop.permute.xlu1 %78  ;;  %v62_v16 = vpop.permute.xlu0 %61 }
  0x8a   :  { %v83_v17 = vmul.f32 %v79_v15, %v71_v12  ;;  %v84_v18 = vmul.f32 %v79_v15, %v72_v13  ;;  %v65_v19 = vmul.f32 %v62_v16, %v53_v14 }
  0x8c   :  { %87 = vst [vmem:[#allocation8 + $0x10] sm:$0xff] %v83_v17 }
  0x8d   :  { %88 = vst [vmem:[#allocation8 + $0x18] sm:$0xff] %v84_v18 }
  0x8e   :  { %68 = vst.msk [vmem:[#allocation7 + $0x8] sm:$0xff] %vm66_vm0, %v65_v19  ;;  %114 = dma.vmem_to_hbm [thread:$0]  %s107_s5, 512, %s109_s8, [#allocation9], %s248_s27, %s248_s27, %s249_s1  }
  0x8f   :  { %101 = dma.vmem_to_hbm [thread:$0]  %s94_s10, 256, %s96_s13, [#allocation4], %s245_s23, %s245_s23, %s246_s24  }
  0x90   :  { %240 = dma.done.wait [#allocation4], 256  }
  0x91   :  { %241 = vsyncadd [#allocation4], 4294967040 }
  0x92   :  { %242 = dma.done.wait [#allocation9], 512  }
  0x93   :  { %243 = vsyncadd [#allocation9], 4294966784 }
  0x94   :  { %123 = vsyncpa [#allocation3], 1 }
  0x95   :  { %124 = vsyncpa [#allocation6], 1 }
  0x96   :  { %125 = vsyncpa [#allocation4], 1 }
  0x97   :  { %126 = vsyncpa [#allocation9], 1 }

</bundles_post_ra>
